<compile_context>
chip_gen: v7x
topology: tpu7x:2x2x1
jax: 0.10.0
libtpu: 0.0.40
codegen_flags: <defaults>
</compile_context>

<pallas_src>
import jax
import jax.numpy as jnp
from jax.experimental import pallas as pl
from jax.experimental.pallas import tpu as pltpu

STATE_SIZE = 24
ACTION_SIZE = 2
HIDDEN = (64, 64)
BN_EPS = 1e-5
LEAKY_SLOPE = 0.01
SUBLANE = 8


def _leaky_relu(x):
    # mul + max is cheaper on the VPU than cmp + select.
    return jnp.maximum(x, LEAKY_SLOPE * x)


def maddpg_actor_kernel(n_ref, x_ref, w0_ref, w1_ref, w2_ref, vec_ref, out_ref):
    Bp = x_ref.shape[0]                       # padded batch (multiple of 8)
    n = n_ref[0]                              # true (unpadded) batch size
    inv_n = 1.0 / n.astype(jnp.float32)

    # Packed parameter tile: row0=gamma, row1=beta, row2=b1, row3=b2 (padded).
    vec = vec_ref[...]                        # (8, 64)
    gamma = vec[0:1, :]
    beta = vec[1:2, :]
    b1 = vec[2:3, :]
    b2 = vec[3:4, :ACTION_SIZE]

    x = x_ref[...]                            # (Bp, 24)

    # fc0: 24 -> 64 (MXU).  Bias intentionally omitted -- training-mode BN's
    # batch-mean subtraction cancels it exactly, and the omission makes the
    # zero-padded rows of h exactly zero (so the unmasked column sum below is
    # already the sum over real rows).
    h = jnp.dot(x, w0_ref[...], preferred_element_type=jnp.float32)

    # BatchNorm1d(64), training-mode biased batch statistics over real rows.
    mean = jnp.sum(h, axis=0, keepdims=True) * inv_n          # (1, 64)
    diff = h - mean
    rows = jax.lax.broadcasted_iota(jnp.int32, (Bp, 1), 0)
    rowmask = (rows < n).astype(jnp.float32)                  # 1 real / 0 pad
    dm = diff * rowmask
    var = jnp.sum(dm * dm, axis=0, keepdims=True) * inv_n     # (1, 64)
    scale = gamma * jax.lax.rsqrt(var + BN_EPS)               # fused BN scale
    h = _leaky_relu(diff * scale + beta)

    # fc1: 64 -> 64 (MXU) + leaky_relu
    h = _leaky_relu(jnp.dot(h, w1_ref[...],
                            preferred_element_type=jnp.float32) + b1)

    # fc2: 64 -> 2 (MXU) + tanh (EUP)
    out_ref[...] = jnp.tanh(
        jnp.dot(h, w2_ref[...], preferred_element_type=jnp.float32) + b2)


def init_params(key):
    """PyTorch-Linear-style init: U(-1/sqrt(fan_in), 1/sqrt(fan_in))."""
    dims = [STATE_SIZE] + list(HIDDEN) + [ACTION_SIZE]
    params = {}
    for i, (fan_in, fan_out) in enumerate(zip(dims[:-1], dims[1:])):
        key, kw, kb = jax.random.split(key, 3)
        bound = 1.0 / jnp.sqrt(float(fan_in))
        params[f"w{i}"] = jax.random.uniform(
            kw, (fan_in, fan_out), jnp.float32, -bound, bound)
        params[f"b{i}"] = jax.random.uniform(
            kb, (1, fan_out), jnp.float32, -bound, bound)
    # BatchNorm1d affine params (PyTorch default: gamma=1, beta=0).
    params["gamma"] = jnp.ones((1, HIDDEN[0]), jnp.float32)
    params["beta"] = jnp.zeros((1, HIDDEN[0]), jnp.float32)
    # Pack the 1-row vectors the kernel needs into ONE sublane-aligned
    # (8, 64) tile: single VMEM input instead of four tiny ones.
    b2_pad = jnp.zeros((1, HIDDEN[0]), jnp.float32)
    b2_pad = b2_pad.at[:, :ACTION_SIZE].set(params["b2"])
    params["vecs"] = jnp.concatenate(
        [params["gamma"], params["beta"], params["b1"], b2_pad,
         jnp.zeros((4, HIDDEN[0]), jnp.float32)], axis=0)        # (8, 64)
    return params


@jax.jit
def maddpg_actor_forward(state, params):
    B = state.shape[0]
    Bp = -(-B // SUBLANE) * SUBLANE          # pad batch to sublane multiple
    if Bp != B:
        state = jnp.pad(state, ((0, Bp - B), (0, 0)))
    n_valid = jnp.full((1,), B, jnp.int32)

    vmem = pl.BlockSpec(memory_space=pltpu.MemorySpace.VMEM)
    smem = pl.BlockSpec(memory_space=pltpu.MemorySpace.SMEM)

    out = pl.pallas_call(
        maddpg_actor_kernel,
        out_shape=jax.ShapeDtypeStruct((Bp, ACTION_SIZE), jnp.float32),
        in_specs=[smem, vmem, vmem, vmem, vmem, vmem],
        out_specs=vmem,
    )(n_valid, state, params["w0"], params["w1"], params["w2"], params["vecs"])
    # TODO(synk): for B beyond a few thousand, add a batch grid with a two-pass
    # (sum / sum-of-squares) BatchNorm, dimension_semantics=("parallel",) for
    # v7x's two TensorCores, and a lane-dense (>=128-wide) output slab.
    return out[:B]


def _reference(state, params):
    """Plain-JAX reference matching PyTorch training-mode forward (with b0)."""
    h = state @ params["w0"] + params["b0"]
    mean = jnp.mean(h, axis=0, keepdims=True)
    var = jnp.mean((h - mean) ** 2, axis=0, keepdims=True)
    h = (h - mean) / jnp.sqrt(var + BN_EPS)
    h = h * params["gamma"] + params["beta"]
    h = jnp.where(h > 0, h, LEAKY_SLOPE * h)
    h = h @ params["w1"] + params["b1"]
    h = jnp.where(h > 0, h, LEAKY_SLOPE * h)
    return jnp.tanh(h @ params["w2"] + params["b2"])


if __name__ == "__main__":
    key = jax.random.PRNGKey(0)
    k_param, k_state = jax.random.split(key)
    params = init_params(k_param)

    # Sublane-aligned batch.
    B = 8
    state = jax.random.normal(k_state, (B, STATE_SIZE), jnp.float32)
    out = jax.block_until_ready(maddpg_actor_forward(state, params))
    ref = _reference(state, params)
    assert out.shape == (B, ACTION_SIZE)
    assert jnp.allclose(out, ref, atol=1e-5, rtol=1e-5)

    # Non-aligned batch exercises the padding + masked-BN-stats path.
    B2 = 5
    state2 = state[:B2]
    out2 = jax.block_until_ready(maddpg_actor_forward(state2, params))
    ref2 = _reference(state2, params)
    assert out2.shape == (B2, ACTION_SIZE)
    assert jnp.allclose(out2, ref2, atol=1e-5, rtol=1e-5)

    print("KERNEL_OK")
</pallas_src>

<mosaic_0001>
module attributes {stable_mosaic.version = 11 : i64} {
  func.func @maddpg_actor_kernel(%arg0: memref<1xi32, #tpu.memory_space<smem>>, %arg1: memref<8x24xf32, #tpu.memory_space<vmem>>, %arg2: memref<24x64xf32, #tpu.memory_space<vmem>>, %arg3: memref<64x64xf32, #tpu.memory_space<vmem>>, %arg4: memref<64x2xf32, #tpu.memory_space<vmem>>, %arg5: memref<8x64xf32, #tpu.memory_space<vmem>>, %arg6: memref<8x2xf32, #tpu.memory_space<vmem>>) attributes {dimension_semantics = [], scalar_prefetch = 0 : i64, scratch_operands = 0 : i64, tpu.core_type = #tpu.core_type<tc>} {
    %c0 = arith.constant 0 : index
    %0 = memref.load %arg0[%c0] : memref<1xi32, #tpu.memory_space<smem>>
    %1 = arith.sitofp %0 : i32 to f32
    %cst = arith.constant 1.000000e+00 : f32
    %2 = arith.divf %cst, %1 : f32
    %c0_0 = arith.constant 0 : index
    %c0_1 = arith.constant 0 : index
    %3 = vector.load %arg5[%c0_0, %c0_1] : memref<8x64xf32, #tpu.memory_space<vmem>>, vector<8x64xf32>
    %4 = vector.extract_strided_slice %3 {offsets = [0, 0], sizes = [1, 64], strides = [1, 1]} : vector<8x64xf32> to vector<1x64xf32>
    %5 = vector.extract_strided_slice %3 {offsets = [1, 0], sizes = [1, 64], strides = [1, 1]} : vector<8x64xf32> to vector<1x64xf32>
    %6 = vector.extract_strided_slice %3 {offsets = [2, 0], sizes = [1, 64], strides = [1, 1]} : vector<8x64xf32> to vector<1x64xf32>
    %7 = vector.extract_strided_slice %3 {offsets = [3, 0], sizes = [1, 2], strides = [1, 1]} : vector<8x64xf32> to vector<1x2xf32>
    %c0_2 = arith.constant 0 : index
    %c0_3 = arith.constant 0 : index
    %8 = vector.load %arg1[%c0_2, %c0_3] : memref<8x24xf32, #tpu.memory_space<vmem>>, vector<8x24xf32>
    %c0_4 = arith.constant 0 : index
    %c0_5 = arith.constant 0 : index
    %9 = vector.load %arg2[%c0_4, %c0_5] : memref<24x64xf32, #tpu.memory_space<vmem>>, vector<24x64xf32>
    %cst_6 = arith.constant dense<0.000000e+00> : vector<8x64xf32>
    %10 = tpu.matmul %8, %9, %cst_6 {dimension_numbers = #tpu.dot_dimension_numbers<[1], [0], [0], [1], [0, 0, 1, 1], [], []>} : vector<8x24xf32>, vector<24x64xf32>, vector<8x64xf32> -> vector<8x64xf32>
    %cst_7 = arith.constant dense<0.000000e+00> : vector<64xf32>
    %11 = vector.multi_reduction <add>, %10, %cst_7 [0] : vector<8x64xf32> to vector<64xf32>
    %12 = vector.shape_cast %11 : vector<64xf32> to vector<1x64xf32>
    %13 = vector.broadcast %2 : f32 to vector<1x64xf32>
    %14 = arith.mulf %12, %13 : vector<1x64xf32>
    %15 = vector.broadcast %14 : vector<1x64xf32> to vector<8x64xf32>
    %16 = arith.subf %10, %15 : vector<8x64xf32>
    %17 = tpu.iota {dimensions = array<i32: 0>} : vector<8x1xi32>
    %18 = vector.broadcast %0 : i32 to vector<8x1xi32>
    %19 = arith.cmpi slt, %17, %18 : vector<8x1xi32>
    %20 = arith.extui %19 : vector<8x1xi1> to vector<8x1xi32>
    %21 = arith.sitofp %20 : vector<8x1xi32> to vector<8x1xf32>
    %22 = vector.broadcast %21 : vector<8x1xf32> to vector<8x64xf32>
    %23 = arith.mulf %16, %22 : vector<8x64xf32>
    %24 = arith.mulf %23, %23 : vector<8x64xf32>
    %cst_8 = arith.constant dense<0.000000e+00> : vector<64xf32>
    %25 = vector.multi_reduction <add>, %24, %cst_8 [0] : vector<8x64xf32> to vector<64xf32>
    %26 = vector.shape_cast %25 : vector<64xf32> to vector<1x64xf32>
    %27 = vector.broadcast %2 : f32 to vector<1x64xf32>
    %28 = arith.mulf %26, %27 : vector<1x64xf32>
    %cst_9 = arith.constant 9.99999974E-6 : f32
    %29 = vector.broadcast %cst_9 : f32 to vector<1x64xf32>
    %30 = arith.addf %28, %29 : vector<1x64xf32>
    %31 = math.rsqrt %30 : vector<1x64xf32>
    %32 = arith.mulf %4, %31 : vector<1x64xf32>
    %33 = vector.broadcast %32 : vector<1x64xf32> to vector<8x64xf32>
    %34 = arith.mulf %16, %33 : vector<8x64xf32>
    %35 = vector.broadcast %5 : vector<1x64xf32> to vector<8x64xf32>
    %36 = arith.addf %34, %35 : vector<8x64xf32>
    %cst_10 = arith.constant 0.00999999977 : f32
    %37 = vector.broadcast %cst_10 : f32 to vector<8x64xf32>
    %38 = arith.mulf %37, %36 : vector<8x64xf32>
    %39 = arith.maximumf %36, %38 : vector<8x64xf32>
    %c0_11 = arith.constant 0 : index
    %c0_12 = arith.constant 0 : index
    %40 = vector.load %arg3[%c0_11, %c0_12] : memref<64x64xf32, #tpu.memory_space<vmem>>, vector<64x64xf32>
    %cst_13 = arith.constant dense<0.000000e+00> : vector<8x64xf32>
    %41 = tpu.matmul %39, %40, %cst_13 {dimension_numbers = #tpu.dot_dimension_numbers<[1], [0], [0], [1], [0, 0, 1, 1], [], []>} : vector<8x64xf32>, vector<64x64xf32>, vector<8x64xf32> -> vector<8x64xf32>
    %42 = vector.broadcast %6 : vector<1x64xf32> to vector<8x64xf32>
    %43 = arith.addf %41, %42 : vector<8x64xf32>
    %cst_14 = arith.constant 0.00999999977 : f32
    %44 = vector.broadcast %cst_14 : f32 to vector<8x64xf32>
    %45 = arith.mulf %44, %43 : vector<8x64xf32>
    %46 = arith.maximumf %43, %45 : vector<8x64xf32>
    %c0_15 = arith.constant 0 : index
    %c0_16 = arith.constant 0 : index
    %47 = vector.load %arg4[%c0_15, %c0_16] : memref<64x2xf32, #tpu.memory_space<vmem>>, vector<64x2xf32>
    %cst_17 = arith.constant dense<0.000000e+00> : vector<8x2xf32>
    %48 = tpu.matmul %46, %47, %cst_17 {dimension_numbers = #tpu.dot_dimension_numbers<[1], [0], [0], [1], [0, 0, 1, 1], [], []>} : vector<8x64xf32>, vector<64x2xf32>, vector<8x2xf32> -> vector<8x2xf32>
    %49 = vector.broadcast %7 : vector<1x2xf32> to vector<8x2xf32>
    %50 = arith.addf %48, %49 : vector<8x2xf32>
    %51 = math.tanh %50 : vector<8x2xf32>
    %c0_18 = arith.constant 0 : index
    %c0_19 = arith.constant 0 : index
    %52 = vector.load %arg6[%c0_18, %c0_19] : memref<8x2xf32, #tpu.memory_space<vmem>>, vector<8x2xf32>
    tpu.vector_store %arg6[%c0_18, %c0_19], %51 {strides = array<i32>} : memref<8x2xf32, #tpu.memory_space<vmem>>, vector<8x2xf32>,
    return
  }
}

</mosaic_0001>

<bundles_post_ra>
// kernel: maddpg_actor_forward.1
= control target key start
LH: loop header
LB: loop body
LE: loop exit
PB: predicated region body
PF: predicated region fallthrough
CT: control target
= control target key end

     0   :  { %12 = vsyncpa [#allocation4], 0  ;;  %s667_s0 = inlined_call_operand.<no memory space> [shape: s32[1], index: 0, kind: input, shape index: {}]   ;;  %s668_s1 = inlined_call_operand.vmem [shape: f32[8,24], index: 1, kind: input, shape index: {}]   ;;  %s669_s2 = inlined_call_operand.hbm [shape: f32[24,64], index: 2, kind: input, shape index: {}]   ;;  %s670_s3 = inlined_call_operand.vmem [shape: f32[64,64], index: 3, kind: input, shape index: {}]   ;;  %s671_s4 = inlined_call_operand.vmem [shape: f32[64,2], index: 4, kind: input, shape index: {}]   ;;  %s672_s5 = inlined_call_operand.hbm [shape: f32[8,64], index: 5, kind: input, shape index: {}]   ;;  %s673_s6 = inlined_call_operand.vmem [shape: f32[8,2], index: 6, kind: output, shape index: {}]  }
   0x1   :  { %13 = vsyncpa [#allocation6], 0  ;;  %s520_s21 = smov [#allocation3]   ;;  %s472_s25 = scalar_lea.hbm %s669_s2, 384 }
   0x2   :  { %s23_s22 = sshll.u32 %s520_s21, 4  ;;  %p473_p0 = scmp.ne.s32.totalorder %s669_s2, %s472_s25  ;;  %s24_s22 = int_to_ptr.vmem [resolvable:$true] %s23_s22 }
   0x3   :  { %p476_p1 = scmp.lt.u32.totalorder %s472_s25, %s669_s2 }
   0x5   :  { %p478_p2 = pnand %p476_p1, %p473_p0 }
   0x7   :  { %481 = shalt.err (!%p478_p2)
}
   0x8   :  { %s482_s30 = scalar_lea.vmem %s24_s22, 384  ;;  %p487_p4 = scmp.lt.s32.totalorder %s24_s22, %s24_s22 }
   0x9   :  { %p483_p3 = scmp.ne.s32.totalorder %s24_s22, %s482_s30  ;;  %p488_p5 = scmp.lt.s32.totalorder %s482_s30, %s482_s30 }
   0xb   :  { %p489_p6 = por %p488_p5, %p487_p4 }
   0xd   :  { %p490_p7 = pnand %p489_p6, %p483_p3 }
   0xf   :  { %493 = shalt.err (!%p490_p7)
}
  0x10   :  { %s521_s7 = smov 128   ;;  %s522_s8 = smov 8  }
  0x11   :  { %29 = dma.hbm_to_vmem [thread:$0]  %s669_s2, 384, %s24_s22, [#allocation4], %s521_s7, %s521_s7, %s522_s8  }
  0x12   :  { %s523_s11 = smov [#allocation5]   ;;  %s494_s15 = scalar_lea.hbm %s672_s5, 128 }
  0x13   :  { %s40_s12 = sshll.u32 %s523_s11, 4  ;;  %p495_p8 = scmp.ne.s32.totalorder %s672_s5, %s494_s15  ;;  %s41_s12 = int_to_ptr.vmem [resolvable:$true] %s40_s12 }
  0x14   :  { %p498_p9 = scmp.lt.u32.totalorder %s494_s15, %s672_s5 }
  0x16   :  { %p500_p10 = pnand %p498_p9, %p495_p8 }
  0x18   :  { %503 = shalt.err (!%p500_p10)
}
  0x19   :  { %s504_s20 = scalar_lea.vmem %s41_s12, 128  ;;  %p509_p12 = scmp.lt.s32.totalorder %s41_s12, %s41_s12 }
  0x1a   :  { %p505_p11 = scmp.ne.s32.totalorder %s41_s12, %s504_s20  ;;  %p510_p13 = scmp.lt.s32.totalorder %s504_s20, %s504_s20 }
  0x1c   :  { %p511_p0 = por %p510_p13, %p509_p12 }
  0x1e   :  { %p512_p1 = pnand %p511_p0, %p505_p11 }
  0x20   :  { %515 = shalt.err (!%p512_p1)
}
  0x21   :  { %43 = dma.hbm_to_vmem [thread:$0]  %s672_s5, 128, %s41_s12, [#allocation6]  }
  0x22   :  { %516 = dma.done.wait [#allocation4], 384  }
  0x23   :  { %517 = vsyncadd [#allocation4], 4294966912 }
  0x24   :  { %518 = dma.done.wait [#allocation6], 128  }
  0x25   :  { %519 = vsyncadd [#allocation6], 4294967168  ;;  %s51_s24 = scvt.s32.f32 %s667_s0  ;;  %v524_v0 = vmov 0.0|0.0   ;;  %vm525_vm0 = vmmov 0   ;;  %v526_v1 = vmov 0.0   ;;  %v57_v3 = vld [vmem:[#allocation3] sm:$0xff]  ;;  %v145_v32 = vlaneseq }
  0x26   :  { %430 = vmatprep.subr.bf16.mxu0 %v524_v0  ;;  %389 = vmatprep.mubr.msk.f32.mxu0 %vm525_vm0, %v526_v1  ;;  %v58_v4 = vld [vmem:[#allocation3 + $0x8] sm:$0xff]  ;;  %v59_v6 = vld [vmem:[#allocation3 + $0x10] sm:$0xff]  ;;  %v56_v7 = vld [vmem:[%s668_s1] sm:$0xff]  ;;  %vm60_vm1 = vcmask 195584   ;;  %vm134_vm2 = vcmask 523264   ;;  %v147_v36 = vstv %s667_s0  ;;  %vm349_vm4 = vcmask 15360  }
  0x27   :  { %v52_v2 = vstv %s51_s24  ;;  %433 = vmatprep.subr.bf16.mxu1 %v524_v0  ;;  %408 = vmatprep.mubr.msk.f32.mxu1 %vm525_vm0, %v526_v1  ;;  %v431_v5 = vpack.c.bf16 %v58_v4, %v57_v3  ;;  %v176_v9 = vld [vmem:[%s670_s3] sm:$0xff]  ;;  %v177_v10 = vld [vmem:[%s670_s3 + $0x8] sm:$0xff]  ;;  %v178_v12 = vld [vmem:[%s670_s3 + $0x10] sm:$0xff]  ;;  %v146_v35 = vshrl.u32 %v145_v32, 7 }
  0x28   :  { %466 = vrcp.f32 %v52_v2  ;;  %v434_v11 = vpack.c.bf16 %v177_v10, %v176_v9  ;;  %v179_v13 = vld [vmem:[%s670_s3 + $0x18] sm:$0xff]  ;;  %v180_v15 = vld [vmem:[%s670_s3 + $0x20] sm:$0xff]  ;;  %v181_v16 = vld [vmem:[%s670_s3 + $0x28] sm:$0xff] }
  0x29   :  { %432 = vmatpush3.bf16.msra.mxu0 %v431_v5  ;;  %v437_v14 = vpack.c.bf16 %v179_v13, %v178_v12  ;;  %v440_v17 = vpack.c.bf16 %v181_v16, %v180_v15  ;;  %v182_v18 = vld [vmem:[%s670_s3 + $0x30] sm:$0xff]  ;;  %v183_v19 = vld [vmem:[%s670_s3 + $0x38] sm:$0xff]  ;;  %v263_v21 = vld [vmem:[%s671_s4] sm:$0xff]  ;;  %vm148_vm3 = vcmp.lt.s32.totalorder %v146_v35, %v147_v36  ;;  %v166_v55 = vsub.s32 0, %v146_v35 }
  0x2a   :  { %387 = vmatprep.subr.mxu0 %v526_v1  ;;  %435 = vmatpush3.bf16.msra.mxu1 %v434_v11  ;;  %v443_v20 = vpack.c.bf16 %v183_v19, %v182_v18  ;;  %v264_v22 = vld [vmem:[%s671_s4 + $0x8] sm:$0xff]  ;;  %v265_v23 = vld [vmem:[%s671_s4 + $0x10] sm:$0xff]  ;;  %v266_v25 = vld [vmem:[%s671_s4 + $0x18] sm:$0xff]  ;;  %v358_v41 = vsel %vm148_vm3, 1.0, %v526_v1  ;;  %v171_v56 = vsub.s32 1, %v146_v35 }
  0x2b   :  { %436 = vmatprep.subr.bf16.mxu1 %v524_v0  ;;  %v446_v24 = vpack.c.bf16 %v264_v22, %v263_v21  ;;  %v449_v26 = vpack.c.bf16 %v266_v25, %v265_v23  ;;  %v55_v54 = vld [vmem:[#allocation5] sm:$0xff]  ;;  %v267_v2 = vld [vmem:[%s671_s4 + $0x20] sm:$0xff]  ;;  %v268_v3 = vld [vmem:[%s671_s4 + $0x28] sm:$0xff] }
  0x2c   :  { %v172_v60 = vrot.slane %v55_v54, %v171_v56  ;;  %v452_v4 = vpack.c.bf16 %v268_v3, %v267_v2  ;;  %v269_v5 = vld [vmem:[%s671_s4 + $0x30] sm:$0xff] }
  0x2d   :  { %388 = vmatpush3.msra.mxu0 %v59_v6  ;;  %v270_v6 = vld [vmem:[%s671_s4 + $0x38] sm:$0xff] }
  0x2e   :  { %390 = vmatmul.mubr.msk.f32.vlgmr.msra.gmra.mrb[0].mxu0 %vm60_vm1, %v56_v7  ;;  %445 = vmatprep.subr.bf16.mxu0 %v524_v0  ;;  %v455_v7 = vpack.c.bf16 %v270_v6, %v269_v5 }
  0x2f   :  { %427 = vmatprep.mubr.msk.f32.mxu0 %vm525_vm0, %v526_v1  ;;  %438 = vmatpush3.bf16.msra.mxu1 %v437_v14 }
  0x30   :  { %439 = vmatprep.subr.bf16.mxu1 %v524_v0  ;;  %447 = vmatpush3.bf16.msra.mxu0 %v446_v24 }
  0x31   :  { %448 = vmatprep.subr.bf16.mxu0 %v524_v0 }
  0x32   :  { %v467_v8 = vpop.eup %466 }
  0x33   :  { %457 = vpush %v467_v8  ;;  %441 = vmatpush3.bf16.msra.mxu1 %v440_v17  ;;  %v186_v8 = vsub.s32 2, %v146_v35 }
  0x34   :  { %442 = vmatprep.subr.bf16.mxu1 %v524_v0  ;;  %450 = vmatpush3.bf16.msra.mxu0 %v449_v26 }
  0x35   :  { %451 = vmatprep.subr.bf16.mxu0 %v524_v0  ;;  %v187_v9 = vrot.slane %v55_v54, %v186_v8 }
  0x37   :  { %444 = vmatpush3.bf16.msra.mxu1 %v443_v20 }
  0x38   :  { %453 = vmatpush3.bf16.msra.mxu0 %v452_v4 }
  0x39   :  { %454 = vmatprep.subr.bf16.mxu0 %v524_v0  ;;  %v273_v0 = vsub.s32 3, %v146_v35 }
  0x3b   :  { %v274_v15 = vrot.slane %v55_v54, %v273_v0 }
  0x3c   :  { %456 = vmatpush3.bf16.msra.mxu0 %v455_v7 }
  0x64   :  { %s458_s3 = spop %457 }
  0x65   :  { %v142_v38 = vstv %s458_s3 }
 0x101   :  { %v130_v27 = vpop.f32.mrb[0].mxu0 }
 0x102   :  { %v135_v28 = vsel %vm134_vm2, %v130_v27, 0.0  ;;  %v391_v29 = vpop.f32.mrb[1].mxu0 }
 0x103   :  { %v136_v30 = vrot.slane %v135_v28, 4 }
 0x105   :  { %v137_v31 = vadd.f32 %v136_v30, %v135_v28 }
 0x107   :  { %v138_v33 = vrot.slane %v137_v31, 2 }
 0x109   :  { %v139_v34 = vadd.f32 %v138_v33, %v137_v31 }
 0x10b   :  { %v140_v37 = vrot.slane %v139_v34, 1 }
 0x10d   :  { %v141_v39 = vadd.f32 %v140_v37, %v139_v34 }
 0x10f   :  { %v143_v40 = vmul.f32 %v142_v38, %v141_v39 }
 0x111   :  { %v144_v42 = vsub.f32 %v130_v27, %v143_v40 }
 0x113   :  { %v151_v43 = vmul.f32 %v358_v41, %v144_v42 }
 0x115   :  { %v152_v44 = vmul.f32 %v151_v43, %v151_v43 }
 0x117   :  { %v153_v45 = vsel %vm134_vm2, %v152_v44, 0.0 }
 0x118   :  { %v154_v46 = vrot.slane %v153_v45, 4 }
 0x11a   :  { %v155_v47 = vadd.f32 %v154_v46, %v153_v45 }
 0x11c   :  { %v156_v48 = vrot.slane %v155_v47, 2 }
 0x11e   :  { %v157_v49 = vadd.f32 %v156_v48, %v155_v47 }
 0x120   :  { %v158_v50 = vrot.slane %v157_v49, 1 }
 0x122   :  { %v159_v51 = vadd.f32 %v158_v50, %v157_v49 }
 0x124   :  { %v160_v52 = vmul.f32 %v159_v51, %v142_v38 }
 0x126   :  { %v161_v53 = vadd.f32 1e-05, %v160_v52 }
 0x128   :  { %468 = vrsqrt.f32 %v161_v53 }
 0x132   :  { %v469_v57 = vpop.eup %468 }
 0x133   :  { %v163_v58 = vmul.f32 %v469_v57, %v55_v54 }
 0x135   :  { %v167_v59 = vrot.slane %v163_v58, %v166_v55 }
 0x137   :  { %v168_v61 = vmul.f32 %v167_v59, %v144_v42 }
 0x139   :  { %v173_v62 = vadd.f32 %v172_v60, %v168_v61 }
 0x13b   :  { %v174_v63 = vmul.f32 0.01, %v173_v62 }
 0x13d   :  { %v175_v1 = vmax.f32 %v173_v62, %v174_v63 }
 0x13f   :  { %409 = vmatmul.mubr.msk.f32.vlgmr.msra.gmra.mrb[0].mxu1 %vm134_vm2, %v175_v1 }
 0x212   :  { %v257_v10 = vpop.f32.mrb[0].mxu1 }
 0x213   :  { %v258_v11 = vadd.f32 %v257_v10, %v187_v9  ;;  %v410_v12 = vpop.f32.mrb[1].mxu1 }
 0x215   :  { %v261_v13 = vmul.f32 0.01, %v258_v11 }
 0x217   :  { %v262_v14 = vmax.f32 %v258_v11, %v261_v13 }
 0x219   :  { %428 = vmatmul.mubr.msk.f32.vlgmr.msra.gmra.mrb[2].mxu0 %vm134_vm2, %v262_v14 }
 0x2ec   :  { %v344_v16 = vpop.f32.mrb[2].mxu0 }
 0x2ed   :  { %v345_v17 = vadd.f32 %v344_v16, %v274_v15  ;;  %v429_v18 = vpop.f32.mrb[3].mxu0 }
 0x2ef   :  { %470 = vtanh.f32 %v345_v17 }
 0x2f9   :  { %v471_v19 = vpop.eup %470 }
 0x2fa   :  { %350 = vst.msk [vmem:[%s673_s6] sm:$0xff] %vm349_vm4, %v471_v19 }
 0x2fb   :  { %355 = vsyncpa [#allocation4], 1 }
 0x2fc   :  { %356 = vsyncpa [#allocation6], 1 }

</bundles_post_ra>
